<compile_context>
chip_gen: v7x
topology: tpu7x:2x2x1
jax: 0.10.0
libtpu: 0.0.40
codegen_flags: <defaults>
</compile_context>

<pallas_src>
import jax
import jax.numpy as jnp
from jax import lax
from jax.experimental import pallas as pl
from jax.experimental.pallas import tpu as pltpu


def _round_up(x, m):
    return (x + m - 1) // m * m


def mlp_kernel(x_ref, w1_ref, b1_ref, w2_ref, b2_ref, w3_ref, b3_ref, o_ref):
    # x_ref: (TB, 8)   w1: (128, 8)  b1: (1, 128)
    # w2: (64, 128)    b2: (1, 64)   w3: (4, 64)  b3: (1, 4)   o_ref: (TB, 4)
    # All matmuls contract the last dim of both operands (x @ W.T), so no
    # transpose is ever materialized -- Mosaic folds it into the MXU operands.
    dn = (((1,), (1,)), ((), ()))
    x = x_ref[...]

    h1 = lax.dot_general(x, w1_ref[...], dn, preferred_element_type=jnp.float32)
    h1 = jnp.maximum(h1 + b1_ref[...], 0.0)                    # (TB, 128)

    h2 = lax.dot_general(h1, w2_ref[...], dn, preferred_element_type=jnp.float32)
    h2 = jnp.maximum(h2 + b2_ref[...], 0.0)                    # (TB, 64)

    h3 = lax.dot_general(h2, w3_ref[...], dn, preferred_element_type=jnp.float32)
    o_ref[...] = (h3 + b3_ref[...]).astype(o_ref.dtype)        # (TB, 4)


def mlp_forward(x, params, *, tb=8192):
    """x: shape (B, ...) flattening to (B, 8). Returns (B, 4). f32 end-to-end."""
    assert tb % 128 == 0, "batch tile must be a multiple of the 128-lane width"
    w1, b1, w2, b2, w3, b3 = params
    B = x.shape[0]
    x2d = x.reshape(B, -1)                          # nn.Flatten()
    in_feat = x2d.shape[1]
    assert in_feat == w1.shape[1], "flattened feature dim must be 8"
    n_out = w3.shape[0]

    # Batch tiling: large tiles amortize the ~0.35us/step overhead; keep >=2
    # grid steps whenever B > 128 so v7x megacore gets both TensorCores busy.
    if B <= 128:
        TB, Bp = B, B                               # single tile, block == full dims
    else:
        TB = min(tb, _round_up(pl.cdiv(B, 2), 128))
        Bp = _round_up(B, TB)
    if Bp != B:
        x2d = jnp.pad(x2d, ((0, Bp - B), (0, 0)))   # only when ragged

    const = lambda shape: pl.BlockSpec(shape, lambda i: (0, 0))  # VMEM-resident

    flops = 2 * (8 * 128 + 128 * 64 + 64 * 4) * Bp
    bytes_accessed = 4 * (Bp * (in_feat + n_out) + sum(int(p.size) for p in params))

    out = pl.pallas_call(
        mlp_kernel,
        out_shape=jax.ShapeDtypeStruct((Bp, n_out), jnp.float32),
        grid=(Bp // TB,),
        in_specs=[
            pl.BlockSpec((TB, in_feat), lambda i: (i, 0)),   # x tile straight from HBM
            const(w1.shape), const(b1.shape),
            const(w2.shape), const(b2.shape),
            const(w3.shape), const(b3.shape),
        ],
        out_specs=pl.BlockSpec((TB, n_out), lambda i: (i, 0)),  # row-major (Bp,4) writeback
        compiler_params=pltpu.CompilerParams(
            dimension_semantics=("parallel",),               # megacore on v7x
            vmem_limit_bytes=48 * 1024 * 1024,               # v5e default (16 MiB) too low
        ),
        cost_estimate=pl.CostEstimate(
            flops=flops, transcendentals=0, bytes_accessed=bytes_accessed),
    )(x2d, w1, b1, w2, b2, w3, b3)

    return out[:B]                                   # (B, 4); no-op slice when aligned


def init_params(key):
    # nn.Linear init: uniform(-1/sqrt(fan_in), 1/sqrt(fan_in)); PyTorch (out, in)
    # weight layout, biases stored as (1, out) for sublane broadcast in-kernel.
    def linear(key, fan_in, fan_out):
        kw, kb = jax.random.split(key)
        bound = 1.0 / float(fan_in) ** 0.5
        w = jax.random.uniform(kw, (fan_out, fan_in), jnp.float32, -bound, bound)
        b = jax.random.uniform(kb, (1, fan_out), jnp.float32, -bound, bound)
        return w, b

    k1, k2, k3 = jax.random.split(key, 3)
    w1, b1 = linear(k1, 8, 128)
    w2, b2 = linear(k2, 128, 64)
    w3, b3 = linear(k3, 64, 4)
    return w1, b1, w2, b2, w3, b3
    # TODO(synk): training utilities (Adam, MSELoss, backward, save/test loops)
    # from the module are not part of the forward pass and are not implemented.


if __name__ == "__main__":
    key = jax.random.PRNGKey(0)
    kp, kx = jax.random.split(key)
    params = init_params(kp)

    # (200, 2, 4) flattens to (200, 8); B=200 exercises the tiled (2-step) +
    # padded path (TB=128, Bp=256).
    x = jax.random.normal(kx, (200, 2, 4), dtype=jnp.float32)

    out = mlp_forward(x, params)
    out = jax.block_until_ready(out)

    # Pure-JAX reference (PyTorch semantics: y = x @ W.T + b)
    w1, b1, w2, b2, w3, b3 = params
    xf = x.reshape(x.shape[0], -1)
    ref = jnp.maximum(xf @ w1.T + b1, 0.0)
    ref = jnp.maximum(ref @ w2.T + b2, 0.0)
    ref = ref @ w3.T + b3

    assert out.shape == (200, 4)
    assert jnp.allclose(out, ref, atol=1e-4, rtol=1e-4)

    print("KERNEL_OK")
</pallas_src>

<mosaic_0001>
module attributes {stable_mosaic.version = 11 : i64} {
  func.func @mlp_kernel(%arg0: i32, %arg1: memref<128x8xf32, #tpu.memory_space<vmem>>, %arg2: memref<128x8xf32, #tpu.memory_space<vmem>>, %arg3: memref<1x128xf32, #tpu.memory_space<vmem>>, %arg4: memref<64x128xf32, #tpu.memory_space<vmem>>, %arg5: memref<1x64xf32, #tpu.memory_space<vmem>>, %arg6: memref<4x64xf32, #tpu.memory_space<vmem>>, %arg7: memref<1x4xf32, #tpu.memory_space<vmem>>, %arg8: memref<128x4xf32, #tpu.memory_space<vmem>>) attributes {dimension_semantics = [#tpu.dimension_semantics<parallel>], iteration_bounds = array<i64: 2>, scalar_prefetch = 0 : i64, scratch_operands = 0 : i64, tpu.core_type = #tpu.core_type<tc>, window_params = [{transform_indices = @transform_0, window_bounds = array<i64: 128, 8>}, {pipeline_mode = #tpu.pipeline_mode<synchronous>, transform_indices = @transform_1, window_bounds = array<i64: 128, 8>}, {pipeline_mode = #tpu.pipeline_mode<synchronous>, transform_indices = @transform_2, window_bounds = array<i64: 1, 128>}, {pipeline_mode = #tpu.pipeline_mode<synchronous>, transform_indices = @transform_3, window_bounds = array<i64: 64, 128>}, {pipeline_mode = #tpu.pipeline_mode<synchronous>, transform_indices = @transform_4, window_bounds = array<i64: 1, 64>}, {pipeline_mode = #tpu.pipeline_mode<synchronous>, transform_indices = @transform_5, window_bounds = array<i64: 4, 64>}, {pipeline_mode = #tpu.pipeline_mode<synchronous>, transform_indices = @transform_6, window_bounds = array<i64: 1, 4>}, {transform_indices = @transform_7, window_bounds = array<i64: 128, 4>}]} {
    %c0 = arith.constant 0 : index
    %c0_0 = arith.constant 0 : index
    %0 = vector.load %arg1[%c0, %c0_0] : memref<128x8xf32, #tpu.memory_space<vmem>>, vector<128x8xf32>
    %c0_1 = arith.constant 0 : index
    %c0_2 = arith.constant 0 : index
    %1 = vector.load %arg2[%c0_1, %c0_2] : memref<128x8xf32, #tpu.memory_space<vmem>>, vector<128x8xf32>
    %cst = arith.constant dense<0.000000e+00> : vector<128x128xf32>
    %2 = tpu.matmul %0, %1, %cst {dimension_numbers = #tpu.dot_dimension_numbers<[1], [1], [0], [0], [0, 0, 1, 0], [], []>} : vector<128x8xf32>, vector<128x8xf32>, vector<128x128xf32> -> vector<128x128xf32>
    %c0_3 = arith.constant 0 : index
    %c0_4 = arith.constant 0 : index
    %3 = vector.load %arg3[%c0_3, %c0_4] : memref<1x128xf32, #tpu.memory_space<vmem>>, vector<1x128xf32>
    %4 = vector.broadcast %3 : vector<1x128xf32> to vector<128x128xf32>
    %5 = arith.addf %2, %4 : vector<128x128xf32>
    %cst_5 = arith.constant 0.000000e+00 : f32
    %6 = vector.broadcast %cst_5 : f32 to vector<128x128xf32>
    %7 = arith.maximumf %5, %6 : vector<128x128xf32>
    %c0_6 = arith.constant 0 : index
    %c0_7 = arith.constant 0 : index
    %8 = vector.load %arg4[%c0_6, %c0_7] : memref<64x128xf32, #tpu.memory_space<vmem>>, vector<64x128xf32>
    %cst_8 = arith.constant dense<0.000000e+00> : vector<128x64xf32>
    %9 = tpu.matmul %7, %8, %cst_8 {dimension_numbers = #tpu.dot_dimension_numbers<[1], [1], [0], [0], [0, 0, 1, 0], [], []>} : vector<128x128xf32>, vector<64x128xf32>, vector<128x64xf32> -> vector<128x64xf32>
    %c0_9 = arith.constant 0 : index
    %c0_10 = arith.constant 0 : index
    %10 = vector.load %arg5[%c0_9, %c0_10] : memref<1x64xf32, #tpu.memory_space<vmem>>, vector<1x64xf32>
    %11 = vector.broadcast %10 : vector<1x64xf32> to vector<128x64xf32>
    %12 = arith.addf %9, %11 : vector<128x64xf32>
    %cst_11 = arith.constant 0.000000e+00 : f32
    %13 = vector.broadcast %cst_11 : f32 to vector<128x64xf32>
    %14 = arith.maximumf %12, %13 : vector<128x64xf32>
    %c0_12 = arith.constant 0 : index
    %c0_13 = arith.constant 0 : index
    %15 = vector.load %arg6[%c0_12, %c0_13] : memref<4x64xf32, #tpu.memory_space<vmem>>, vector<4x64xf32>
    %cst_14 = arith.constant dense<0.000000e+00> : vector<128x4xf32>
    %16 = tpu.matmul %14, %15, %cst_14 {dimension_numbers = #tpu.dot_dimension_numbers<[1], [1], [0], [0], [0, 0, 1, 0], [], []>} : vector<128x64xf32>, vector<4x64xf32>, vector<128x4xf32> -> vector<128x4xf32>
    %c0_15 = arith.constant 0 : index
    %c0_16 = arith.constant 0 : index
    %17 = vector.load %arg7[%c0_15, %c0_16] : memref<1x4xf32, #tpu.memory_space<vmem>>, vector<1x4xf32>
    %18 = vector.broadcast %17 : vector<1x4xf32> to vector<128x4xf32>
    %19 = arith.addf %16, %18 : vector<128x4xf32>
    %c0_17 = arith.constant 0 : index
    %c0_18 = arith.constant 0 : index
    %20 = vector.load %arg8[%c0_17, %c0_18] : memref<128x4xf32, #tpu.memory_space<vmem>>, vector<128x4xf32>
    tpu.vector_store %arg8[%c0_17, %c0_18], %19 {strides = array<i32>} : memref<128x4xf32, #tpu.memory_space<vmem>>, vector<128x4xf32>,
    return
  }
  func.func @transform_0(%arg0: i32) -> (i32, i32) {
    %c0_i32 = arith.constant 0 : i32
    %c0_i32_0 = arith.constant 0 : i32
    return %arg0, %c0_i32 : i32, i32
  }
  func.func @transform_1(%arg0: i32) -> (i32, i32) {
    %c0_i32 = arith.constant 0 : i32
    %c0_i32_0 = arith.constant 0 : i32
    %c0_i32_1 = arith.constant 0 : i32
    return %c0_i32, %c0_i32_0 : i32, i32
  }
  func.func @transform_2(%arg0: i32) -> (i32, i32) {
    %c0_i32 = arith.constant 0 : i32
    %c0_i32_0 = arith.constant 0 : i32
    %c0_i32_1 = arith.constant 0 : i32
    return %c0_i32, %c0_i32_0 : i32, i32
  }
  func.func @transform_3(%arg0: i32) -> (i32, i32) {
    %c0_i32 = arith.constant 0 : i32
    %c0_i32_0 = arith.constant 0 : i32
    %c0_i32_1 = arith.constant 0 : i32
    return %c0_i32, %c0_i32_0 : i32, i32
  }
  func.func @transform_4(%arg0: i32) -> (i32, i32) {
    %c0_i32 = arith.constant 0 : i32
    %c0_i32_0 = arith.constant 0 : i32
    %c0_i32_1 = arith.constant 0 : i32
    return %c0_i32, %c0_i32_0 : i32, i32
  }
  func.func @transform_5(%arg0: i32) -> (i32, i32) {
    %c0_i32 = arith.constant 0 : i32
    %c0_i32_0 = arith.constant 0 : i32
    %c0_i32_1 = arith.constant 0 : i32
    return %c0_i32, %c0_i32_0 : i32, i32
  }
  func.func @transform_6(%arg0: i32) -> (i32, i32) {
    %c0_i32 = arith.constant 0 : i32
    %c0_i32_0 = arith.constant 0 : i32
    %c0_i32_1 = arith.constant 0 : i32
    return %c0_i32, %c0_i32_0 : i32, i32
  }
  func.func @transform_7(%arg0: i32) -> (i32, i32) {
    %c0_i32 = arith.constant 0 : i32
    %c0_i32_0 = arith.constant 0 : i32
    return %arg0, %c0_i32 : i32, i32
  }
}

</mosaic_0001>

<bundles_post_ra>
// kernel: tpu_custom_call.1
= control target key start
LH: loop header
LB: loop body
LE: loop exit
PB: predicated region body
PF: predicated region fallthrough
CT: control target
= control target key end

     0   :  { %s1411_s24 = smov 0   ;;  %s1643_s0 = inlined_call_operand.vmem [shape: f32[256,8], index: 0, kind: input, shape index: {}]   ;;  %s1644_s1 = inlined_call_operand.vmem [shape: f32[128,8], index: 1, kind: input, shape index: {}]   ;;  %s1645_s2 = inlined_call_operand.vmem [shape: f32[1,128], index: 2, kind: input, shape index: {}]   ;;  %s1646_s3 = inlined_call_operand.vmem [shape: f32[64,128], index: 3, kind: input, shape index: {}]   ;;  %s1647_s4 = inlined_call_operand.vmem [shape: f32[1,64], index: 4, kind: input, shape index: {}]   ;;  %s1648_s5 = inlined_call_operand.vmem [shape: f32[4,64], index: 5, kind: input, shape index: {}]   ;;  %s1649_s6 = inlined_call_operand.vmem [shape: f32[1,4], index: 6, kind: input, shape index: {}]   ;;  %s1650_s7 = inlined_call_operand.vmem [shape: f32[256,4], index: 7, kind: output, shape index: {}]  }
   0x1 LB: > { %s1033_s25 = sadd.s32 4294967295, %s1369_s24   ;;  %p1037_p0 = scmp.ge.s32.totalorder %s1369_s24, 1  ;;  %s1369_s24 = sphi %s1411_s24, %s17_s24  }
   0x2   : > { %p238_p1 = scmp.lt.s32.totalorder %s1369_s24, 3 }
   0x4   : > { %p239_p2 = pnand %p1037_p0, %p238_p1 }
   0x5   : > { %v298_v0 = vld [vmem:[%s1644_s1] sm:$0xff] (!%p239_p2)  ;;  %v299_v1 = vld [vmem:[%s1644_s1 + $0x8] sm:$0xff] (!%p239_p2)  ;;  %vm321_vm0 = vcmask (!%p239_p2), 64512   ;;  %v300_v2 = vld [vmem:[%s1644_s1 + $0x10] sm:$0xff] (!%p239_p2)  ;;  %s1038_s9 = sshll.u32 (!%p239_p2), %s1033_s25, 4  ;;  %vm763_vm2 = vcmask (!%p239_p2), 523264  }
   0x6   : > { %242 = sbr.rel (%p239_p2) target bundleno = 752 (0x2f0), region = 48  ;;  %v1291_v3 = vpack.c.bf16 (!%p239_p2), %v299_v1, %v298_v0  ;;  %vm1430_vm1 = vmpackc.low (!%p239_p2), %vm321_vm0, %vm321_vm0  ;;  %v301_v5 = vld [vmem:[%s1644_s1 + $0x18] sm:$0xff] (!%p239_p2)  ;;  %p271_p3 = scmp.lt.s32.totalorder (!%p239_p2), %s1038_s9, 31  ;;  %v302_v7 = vld [vmem:[%s1644_s1 + $0x20] sm:$0xff] (!%p239_p2)  ;;  %vm960_vm3 = vcmask (!%p239_p2), 31744  }
   0x7   : > { %v1297_v6 = vpack.c.bf16 (!%p239_p2), %v301_v5, %v300_v2  ;;  %v303_v8 = vld [vmem:[%s1644_s1 + $0x28] sm:$0xff] (!%p239_p2)  ;;  %v579_v9 = vld [vmem:[%s1646_s3] sm:$0xff] (!%p239_p2)  ;;  %v581_v11 = vld [vmem:[%s1646_s3 + $0x10] sm:$0xff] (!%p239_p2) }
   0x8   : > { %1293 = vmatprep.subr.msk.bf16.mxu0 (!%p239_p2), %vm1430_vm1, %v1291_v3  ;;  %v580_v10 = vld [vmem:[%s1646_s3 + $0x8] sm:$0xff] (!%p239_p2)  ;;  %v582_v12 = vld [vmem:[%s1646_s3 + $0x18] sm:$0xff] (!%p239_p2)  ;;  %v1303_v16 = vpack.c.bf16 (!%p239_p2), %v303_v8, %v302_v7  ;;  %v583_v17 = vld [vmem:[%s1646_s3 + $0x20] sm:$0xff] (!%p239_p2) }
   0x9   : > { %1296 = vmatpush3.bf16.xpose.msk.msra.mxu0 (!%p239_p2), %vm1430_vm1, %v1291_v3  ;;  %v1339_v14 = vpack.c.bf16 (!%p239_p2), %v580_v10, %v579_v9  ;;  %v1343_v15 = vpack.c.bf16 (!%p239_p2), %v582_v12, %v581_v11  ;;  %v584_v18 = vld [vmem:[%s1646_s3 + $0x28] sm:$0xff] (!%p239_p2)  ;;  %v304_v19 = vld [vmem:[%s1644_s1 + $0x30] sm:$0xff] (!%p239_p2)  ;;  %v305_v20 = vld [vmem:[%s1644_s1 + $0x38] sm:$0xff] (!%p239_p2) }
   0xa   : > { %1299 = vmatprep.subr.msk.bf16.mxu0 (!%p239_p2), %vm1430_vm1, %v1297_v6  ;;  %v1347_v21 = vpack.c.bf16 (!%p239_p2), %v584_v18, %v583_v17  ;;  %v1309_v22 = vpack.c.bf16 (!%p239_p2), %v305_v20, %v304_v19  ;;  %v585_v23 = vld [vmem:[%s1646_s3 + $0x30] sm:$0xff] (!%p239_p2)  ;;  %v586_v24 = vld [vmem:[%s1646_s3 + $0x38] sm:$0xff] (!%p239_p2)  ;;  %v306_v25 = vld [vmem:[%s1644_s1 + $0x40] sm:$0xff] (!%p239_p2) }
   0xb   : > { %1340 = vmatprep.subr.bf16.mxu1 (!%p239_p2), %v1339_v14  ;;  %v307_v26 = vld [vmem:[%s1644_s1 + $0x48] sm:$0xff] (!%p239_p2)  ;;  %v1351_v27 = vpack.c.bf16 (!%p239_p2), %v586_v24, %v585_v23  ;;  %v308_v29 = vld [vmem:[%s1644_s1 + $0x50] sm:$0xff] (!%p239_p2)  ;;  %v309_v30 = vld [vmem:[%s1644_s1 + $0x58] sm:$0xff] (!%p239_p2) }
   0xc   : > { %1342 = vmatpush3.bf16.xpose.msra.mxu1 (!%p239_p2), %v1339_v14  ;;  %v1315_v28 = vpack.c.bf16 (!%p239_p2), %v307_v26, %v306_v25  ;;  %v1321_v31 = vpack.c.bf16 (!%p239_p2), %v309_v30, %v308_v29  ;;  %v310_v32 = vld [vmem:[%s1644_s1 + $0x60] sm:$0xff] (!%p239_p2)  ;;  %v311_v33 = vld [vmem:[%s1644_s1 + $0x68] sm:$0xff] (!%p239_p2)  ;;  %v312_v35 = vld [vmem:[%s1644_s1 + $0x70] sm:$0xff] (!%p239_p2) }
   0xd   : > { %s1654_s9 = smov (!%p271_p3, %s1038_s9), 31  ;;  %1344 = vmatprep.subr.bf16.mxu1 %v1343_v15  ;;  %v1327_v34 = vpack.c.bf16 %v311_v33, %v310_v32  ;;  %v313_v36 = vld [vmem:[%s1644_s1 + $0x78] sm:$0xff]  ;;  %v755_v53 = vld [vmem:[%s1648_s5] sm:$0xf] }
   0xe   : > { %s1039_s16 = sshll.u32 %s1654_s9, 3  ;;  %v1333_v37 = vpack.c.bf16 %v313_v36, %v312_v35  ;;  %v1042_v54 = vld [vmem:[%s1645_s2] ss:$0 sm:$0xff] }
   0xf   : > { %s1460_s21 = scalar_lea.vmem %s1643_s0, %s1039_s16  ;;  %s1606_s28 = scalar_lea.vmem %s1650_s7, %s1039_s16 }
  0x10   : > { %v282_v13 = vld [vmem:[%s1460_s21] sm:$0xff]  ;;  %v283_v38 = vld [vmem:[%s1460_s21 + $0x8] sm:$0xff]  ;;  %v284_v39 = vld [vmem:[%s1460_s21 + $0x10] sm:$0xff] }
  0x11   : > { %1201 = vmatprep.mubr.msk.f32.mxu0 %vm321_vm0, %v282_v13  ;;  %1302 = vmatpush3.bf16.xpose.msk.msra.mxu0 %vm1430_vm1, %v1297_v6  ;;  %v285_v40 = vld [vmem:[%s1460_s21 + $0x18] sm:$0xff]  ;;  %v286_v41 = vld [vmem:[%s1460_s21 + $0x20] sm:$0xff]  ;;  %v287_v42 = vld [vmem:[%s1460_s21 + $0x28] sm:$0xff] }
  0x12   : > { %1305 = vmatprep.subr.msk.bf16.mxu0 %vm1430_vm1, %v1303_v16  ;;  %v288_v43 = vld [vmem:[%s1460_s21 + $0x30] sm:$0xff]  ;;  %v289_v44 = vld [vmem:[%s1460_s21 + $0x38] sm:$0xff]  ;;  %v290_v45 = vld [vmem:[%s1460_s21 + $0x40] sm:$0xff] }
  0x13   : > { %v291_v46 = vld [vmem:[%s1460_s21 + $0x48] sm:$0xff]  ;;  %v292_v47 = vld [vmem:[%s1460_s21 + $0x50] sm:$0xff]  ;;  %v293_v48 = vld [vmem:[%s1460_s21 + $0x58] sm:$0xff] }
  0x14   : > { %1346 = vmatpush3.bf16.xpose.msra.mxu1 %v1343_v15  ;;  %v294_v49 = vld [vmem:[%s1460_s21 + $0x60] sm:$0xff]  ;;  %v295_v50 = vld [vmem:[%s1460_s21 + $0x68] sm:$0xff]  ;;  %v296_v51 = vld [vmem:[%s1460_s21 + $0x70] sm:$0xff] }
  0x15   : > { %1348 = vmatprep.subr.bf16.mxu1 %v1347_v21  ;;  %v297_v52 = vld [vmem:[%s1460_s21 + $0x78] sm:$0xff] }
  0x19   : > { %1308 = vmatpush3.bf16.xpose.msk.msra.mxu0 %vm1430_vm1, %v1303_v16 }
  0x1a   : > { %1311 = vmatprep.subr.msk.bf16.mxu0 %vm1430_vm1, %v1309_v22 }
  0x1c   : > { %1350 = vmatpush3.bf16.xpose.msra.mxu1 %v1347_v21 }
  0x1d   : > { %1352 = vmatprep.subr.bf16.mxu1 %v1351_v27 }
  0x21   : > { %1314 = vmatpush3.bf16.xpose.msk.msra.mxu0 %vm1430_vm1, %v1309_v22 }
  0x22   : > { %1317 = vmatprep.subr.msk.bf16.mxu0 %vm1430_vm1, %v1315_v28 }
  0x24   : > { %1354 = vmatpush3.bf16.xpose.msra.mxu1 %v1351_v27 }
  0x25   : > { %1265 = vmatprep.subr.msk.mxu1 %vm763_vm2, %v755_v53 }
  0x29   : > { %1320 = vmatpush3.bf16.xpose.msk.msra.mxu0 %vm1430_vm1, %v1315_v28 }
  0x2a   : > { %1323 = vmatprep.subr.msk.bf16.mxu0 %vm1430_vm1, %v1321_v31 }
  0x31   : > { %1326 = vmatpush3.bf16.xpose.msk.msra.mxu0 %vm1430_vm1, %v1321_v31 }
  0x32   : > { %1329 = vmatprep.subr.msk.bf16.mxu0 %vm1430_vm1, %v1327_v34 }
  0x39   : > { %1332 = vmatpush3.bf16.xpose.msk.msra.mxu0 %vm1430_vm1, %v1327_v34 }
  0x3a   : > { %1335 = vmatprep.subr.msk.bf16.mxu0 %vm1430_vm1, %v1333_v37 }
  0x41   : > { %1338 = vmatpush3.bf16.xpose.msk.msra.mxu0 %vm1430_vm1, %v1333_v37 }
  0x48   : > { %1202 = vmatmul.mubr.msk.f32.vlgmr.msra.gmra.mrb[0].mxu0 %vm321_vm0, %v283_v38 }
  0x49   : > { %1204 = vmatprep.mubr.msk.f32.mxu0 %vm321_vm0, %v284_v39  ;;  %v1075_v39 = vld [vmem:[%s1647_s4] ss:$0 sm:$0xff] }
  0x4c   : > { %1205 = vmatmul.mubr.msk.f32.gmra.mrb[2].mxu0 %vm321_vm0, %v285_v40 }
  0x4d   : > { %1207 = vmatprep.mubr.msk.f32.mxu0 %vm321_vm0, %v286_v41 }
  0x50   : > { %1208 = vmatmul.mubr.msk.f32.gmra.mrb[4].mxu0 %vm321_vm0, %v287_v42 }
  0x51   : > { %1210 = vmatprep.mubr.msk.f32.mxu0 %vm321_vm0, %v288_v43 }
  0x54   : > { %1211 = vmatmul.mubr.msk.f32.gmra.mrb[6].mxu0 %vm321_vm0, %v289_v44 }
  0x55   : > { %1213 = vmatprep.mubr.msk.f32.mxu0 %vm321_vm0, %v290_v45 }
  0x58   : > { %1214 = vmatmul.mubr.msk.f32.gmra.mrb[8].mxu0 %vm321_vm0, %v291_v46 }
  0x59   : > { %1216 = vmatprep.mubr.msk.f32.mxu0 %vm321_vm0, %v292_v47 }
  0x5c   : > { %1217 = vmatmul.mubr.msk.f32.gmra.mrb[10].mxu0 %vm321_vm0, %v293_v48 }
  0x5d   : > { %1219 = vmatprep.mubr.msk.f32.mxu0 %vm321_vm0, %v294_v49 }
  0x60   : > { %1220 = vmatmul.mubr.msk.f32.gmra.mrb[12].mxu0 %vm321_vm0, %v295_v50 }
  0x61   : > { %1222 = vmatprep.mubr.msk.f32.mxu0 %vm321_vm0, %v296_v51 }
  0x64   : > { %1223 = vmatmul.mubr.msk.f32.gmra.mrb[14].mxu0 %vm321_vm0, %v297_v52 }
 0x11b   : > { %v1203_v55 = vpop.f32.mrb[0].mxu0 }
 0x11c   : > { %v490_v56 = vadd.f32 %v1203_v55, %v1042_v54  ;;  %v484_v57 = vpop.f32.mrb[1].mxu0 }
 0x11d   : > { %v485_v58 = vadd.f32 %v1042_v54, %v484_v57 }
 0x11e   : > { %v564_v61 = vmax.f32 %v490_v56, 0.0 }
 0x11f   : > { %v1206_v59 = vpop.f32.mrb[2].mxu0  ;;  %v563_v60 = vmax.f32 %v485_v58, 0.0 }
 0x120   : > { %v500_v62 = vadd.f32 %v1206_v59, %v1042_v54  ;;  %v494_v63 = vpop.f32.mrb[3].mxu0 }
 0x121   : > { %v495_v0 = vadd.f32 %v1042_v54, %v494_v63  ;;  %1241 = vmatprep.mubr.f32.mxu1 %v563_v60 }
 0x122   : > { %1242 = vmatmul.mubr.f32.vlgmr.msra.gmra.mrb[0].mxu1 %v564_v61  ;;  %v566_v3 = vmax.f32 %v500_v62, 0.0 }
 0x123   : > { %v565_v1 = vmax.f32 %v495_v0, 0.0  ;;  %v1209_v2 = vpop.f32.mrb[4].mxu0  ;;  %1266 = vmatpush3.xpose.msk.msra.mxu1 %vm763_vm2, %v755_v53 }
 0x124   : > { %v510_v4 = vadd.f32 %v1209_v2, %v1042_v54  ;;  %v504_v5 = vpop.f32.mrb[5].mxu0 }
 0x125   : > { %v505_v6 = vadd.f32 %v1042_v54, %v504_v5  ;;  %1244 = vmatprep.mubr.f32.mxu1 %v565_v1 }
 0x126   : > { %1245 = vmatmul.mubr.f32.gmra.mrb[2].mxu1 %v566_v3  ;;  %v568_v9 = vmax.f32 %v510_v4, 0.0 }
 0x127   : > { %v567_v7 = vmax.f32 %v505_v6, 0.0  ;;  %v1212_v8 = vpop.f32.mrb[6].mxu0 }
 0x128   : > { %v520_v10 = vadd.f32 %v1212_v8, %v1042_v54  ;;  %v514_v11 = vpop.f32.mrb[7].mxu0 }
 0x129   : > { %v515_v12 = vadd.f32 %v1042_v54, %v514_v11  ;;  %1247 = vmatprep.mubr.f32.mxu1 %v567_v7 }
 0x12a   : > { %1248 = vmatmul.mubr.f32.gmra.mrb[4].mxu1 %v568_v9  ;;  %v570_v15 = vmax.f32 %v520_v10, 0.0 }
 0x12b   : > { %v569_v13 = vmax.f32 %v515_v12, 0.0  ;;  %v1215_v14 = vpop.f32.mrb[8].mxu0 }
 0x12c   : > { %v530_v16 = vadd.f32 %v1215_v14, %v1042_v54  ;;  %v524_v17 = vpop.f32.mrb[9].mxu0 }
 0x12d   : > { %v525_v18 = vadd.f32 %v1042_v54, %v524_v17  ;;  %1250 = vmatprep.mubr.f32.mxu1 %v569_v13 }
 0x12e   : > { %1251 = vmatmul.mubr.f32.gmra.mrb[6].mxu1 %v570_v15  ;;  %v572_v21 = vmax.f32 %v530_v16, 0.0 }
 0x12f   : > { %v571_v19 = vmax.f32 %v525_v18, 0.0  ;;  %v1218_v20 = vpop.f32.mrb[10].mxu0 }
 0x130   : > { %v540_v22 = vadd.f32 %v1218_v20, %v1042_v54  ;;  %v534_v23 = vpop.f32.mrb[11].mxu0 }
 0x131   : > { %v535_v24 = vadd.f32 %v1042_v54, %v534_v23  ;;  %1253 = vmatprep.mubr.f32.mxu1 %v571_v19 }
 0x132   : > { %1254 = vmatmul.mubr.f32.gmra.mrb[8].mxu1 %v572_v21  ;;  %v574_v27 = vmax.f32 %v540_v22, 0.0 }
 0x133   : > { %v573_v25 = vmax.f32 %v535_v24, 0.0  ;;  %v1221_v26 = vpop.f32.mrb[12].mxu0  ;;  %v1076_v24 = vld [vmem:[%s1649_s6] ss:$0 sm:$0xff] }
 0x134   : > { %v550_v28 = vadd.f32 %v1221_v26, %v1042_v54  ;;  %v544_v29 = vpop.f32.mrb[13].mxu0 }
 0x135   : > { %v545_v30 = vadd.f32 %v1042_v54, %v544_v29  ;;  %1256 = vmatprep.mubr.f32.mxu1 %v573_v25 }
 0x136   : > { %1257 = vmatmul.mubr.f32.gmra.mrb[10].mxu1 %v574_v27  ;;  %v576_v33 = vmax.f32 %v550_v28, 0.0 }
 0x137   : > { %v575_v31 = vmax.f32 %v545_v30, 0.0  ;;  %v1224_v32 = vpop.f32.mrb[14].mxu0 }
 0x138   : > { %v560_v34 = vadd.f32 %v1224_v32, %v1042_v54  ;;  %v554_v35 = vpop.f32.mrb[15].mxu0 }
 0x139   : > { %v555_v36 = vadd.f32 %v1042_v54, %v554_v35  ;;  %1259 = vmatprep.mubr.f32.mxu1 %v575_v31 }
 0x13a   : > { %1260 = vmatmul.mubr.f32.gmra.mrb[12].mxu1 %v576_v33  ;;  %v578_v38 = vmax.f32 %v560_v34, 0.0 }
 0x13b   : > { %v577_v37 = vmax.f32 %v555_v36, 0.0 }
 0x13d   : > { %1262 = vmatprep.mubr.f32.mxu1 %v577_v37 }
 0x13e   : > { %1263 = vmatmul.mubr.f32.gmra.mrb[14].mxu1 %v578_v38 }
 0x1f5   : > { %v1243_v40 = vpop.f32.mrb[0].mxu1 }
 0x1f6   : > { %v666_v41 = vadd.f32 %v1243_v40, %v1075_v39  ;;  %v660_v42 = vpop.f32.mrb[1].mxu1 }
 0x1f7   : > { %v661_v43 = vadd.f32 %v1075_v39, %v660_v42 }
 0x1f8   : > { %v740_v46 = vmax.f32 %v666_v41, 0.0 }
 0x1f9   : > { %v739_v44 = vmax.f32 %v661_v43, 0.0  ;;  %v1246_v45 = vpop.f32.mrb[2].mxu1 }
 0x1fa   : > { %v676_v47 = vadd.f32 %v1246_v45, %v1075_v39  ;;  %v670_v48 = vpop.f32.mrb[3].mxu1 }
 0x1fb   : > { %v671_v49 = vadd.f32 %v1075_v39, %v670_v48  ;;  %1267 = vmatprep.mubr.msk.f32.mxu1 %vm763_vm2, %v739_v44 }
 0x1fc   : > { %1268 = vmatmul.mubr.msk.f32.vlgmr.msra.gmra.mrb[16].mxu1 %vm763_vm2, %v740_v46  ;;  %v742_v52 = vmax.f32 %v676_v47, 0.0 }
 0x1fd   : > { %v741_v50 = vmax.f32 %v671_v49, 0.0  ;;  %v1249_v51 = vpop.f32.mrb[4].mxu1 }
 0x1fe   : > { %v686_v53 = vadd.f32 %v1249_v51, %v1075_v39  ;;  %v680_v54 = vpop.f32.mrb[5].mxu1 }
 0x1ff   : > { %v681_v55 = vadd.f32 %v1075_v39, %v680_v54  ;;  %1270 = vmatprep.mubr.msk.f32.mxu1 %vm763_vm2, %v741_v50 }
 0x200   : > { %1271 = vmatmul.mubr.msk.f32.gmra.mrb[18].mxu1 %vm763_vm2, %v742_v52  ;;  %v744_v58 = vmax.f32 %v686_v53, 0.0 }
 0x201   : > { %v743_v56 = vmax.f32 %v681_v55, 0.0  ;;  %v1252_v57 = vpop.f32.mrb[6].mxu1 }
 0x202   : > { %v696_v59 = vadd.f32 %v1252_v57, %v1075_v39  ;;  %v690_v60 = vpop.f32.mrb[7].mxu1 }
 0x203   : > { %v691_v61 = vadd.f32 %v1075_v39, %v690_v60  ;;  %1273 = vmatprep.mubr.msk.f32.mxu1 %vm763_vm2, %v743_v56 }
 0x204   : > { %1274 = vmatmul.mubr.msk.f32.gmra.mrb[20].mxu1 %vm763_vm2, %v744_v58  ;;  %v746_v0 = vmax.f32 %v696_v59, 0.0 }
 0x205   : > { %v745_v62 = vmax.f32 %v691_v61, 0.0  ;;  %v1255_v63 = vpop.f32.mrb[8].mxu1 }
 0x206   : > { %v706_v1 = vadd.f32 %v1255_v63, %v1075_v39  ;;  %v700_v2 = vpop.f32.mrb[9].mxu1 }
 0x207   : > { %v701_v3 = vadd.f32 %v1075_v39, %v700_v2  ;;  %1276 = vmatprep.mubr.msk.f32.mxu1 %vm763_vm2, %v745_v62 }
 0x208   : > { %1277 = vmatmul.mubr.msk.f32.gmra.mrb[22].mxu1 %vm763_vm2, %v746_v0  ;;  %v748_v6 = vmax.f32 %v706_v1, 0.0 }
 0x209   : > { %v747_v4 = vmax.f32 %v701_v3, 0.0  ;;  %v1258_v5 = vpop.f32.mrb[10].mxu1 }
 0x20a   : > { %v716_v7 = vadd.f32 %v1258_v5, %v1075_v39  ;;  %v710_v8 = vpop.f32.mrb[11].mxu1 }
 0x20b   : > { %v711_v9 = vadd.f32 %v1075_v39, %v710_v8  ;;  %1279 = vmatprep.mubr.msk.f32.mxu1 %vm763_vm2, %v747_v4 }
 0x20c   : > { %1280 = vmatmul.mubr.msk.f32.gmra.mrb[24].mxu1 %vm763_vm2, %v748_v6  ;;  %v750_v12 = vmax.f32 %v716_v7, 0.0 }
 0x20d   : > { %v749_v10 = vmax.f32 %v711_v9, 0.0  ;;  %v1261_v11 = vpop.f32.mrb[12].mxu1 }
 0x20e   : > { %v726_v13 = vadd.f32 %v1261_v11, %v1075_v39  ;;  %v720_v14 = vpop.f32.mrb[13].mxu1 }
 0x20f   : > { %v721_v15 = vadd.f32 %v1075_v39, %v720_v14  ;;  %1282 = vmatprep.mubr.msk.f32.mxu1 %vm763_vm2, %v749_v10 }
 0x210   : > { %1283 = vmatmul.mubr.msk.f32.gmra.mrb[26].mxu1 %vm763_vm2, %v750_v12  ;;  %v752_v18 = vmax.f32 %v726_v13, 0.0 }
 0x211   : > { %v751_v16 = vmax.f32 %v721_v15, 0.0  ;;  %v1264_v17 = vpop.f32.mrb[14].mxu1 }
 0x212   : > { %v736_v19 = vadd.f32 %v1264_v17, %v1075_v39  ;;  %v730_v20 = vpop.f32.mrb[15].mxu1 }
 0x213   : > { %v731_v21 = vadd.f32 %v1075_v39, %v730_v20  ;;  %1285 = vmatprep.mubr.msk.f32.mxu1 %vm763_vm2, %v751_v16 }
 0x214   : > { %1286 = vmatmul.mubr.msk.f32.gmra.mrb[28].mxu1 %vm763_vm2, %v752_v18  ;;  %v754_v23 = vmax.f32 %v736_v19, 0.0 }
 0x215   : > { %v753_v22 = vmax.f32 %v731_v21, 0.0 }
 0x217   : > { %1288 = vmatprep.mubr.msk.f32.mxu1 %vm763_vm2, %v753_v22 }
 0x218   : > { %1289 = vmatmul.mubr.msk.f32.gmra.mrb[30].mxu1 %vm763_vm2, %v754_v23 }
 0x2cf   : > { %v1269_v25 = vpop.f32.mrb[16].mxu1 }
 0x2d0   : > { %v887_v26 = vadd.f32 %v1269_v25, %v1076_v24  ;;  %v881_v27 = vpop.f32.mrb[17].mxu1 }
 0x2d1   : > { %v882_v28 = vadd.f32 %v1076_v24, %v881_v27 }
 0x2d2   : > { %962 = vst.msk [vmem:[%s1606_s28 + $0x8] sm:$0xff] %vm960_vm3, %v887_v26 }
 0x2d3   : > { %961 = vst.msk [vmem:[%s1606_s28] sm:$0xff] %vm960_vm3, %v882_v28  ;;  %v1272_v29 = vpop.f32.mrb[18].mxu1 }
 0x2d4   : > { %v897_v30 = vadd.f32 %v1272_v29, %v1076_v24  ;;  %v891_v31 = vpop.f32.mrb[19].mxu1 }
 0x2d5   : > { %v892_v32 = vadd.f32 %v1076_v24, %v891_v31 }
 0x2d6   : > { %964 = vst.msk [vmem:[%s1606_s28 + $0x18] sm:$0xff] %vm960_vm3, %v897_v30 }
 0x2d7   : > { %963 = vst.msk [vmem:[%s1606_s28 + $0x10] sm:$0xff] %vm960_vm3, %v892_v32  ;;  %v1275_v33 = vpop.f32.mrb[20].mxu1 }
 0x2d8   : > { %v907_v34 = vadd.f32 %v1275_v33, %v1076_v24  ;;  %v901_v35 = vpop.f32.mrb[21].mxu1 }
 0x2d9   : > { %v902_v36 = vadd.f32 %v1076_v24, %v901_v35 }
 0x2da   : > { %966 = vst.msk [vmem:[%s1606_s28 + $0x28] sm:$0xff] %vm960_vm3, %v907_v34 }
 0x2db   : > { %965 = vst.msk [vmem:[%s1606_s28 + $0x20] sm:$0xff] %vm960_vm3, %v902_v36  ;;  %v1278_v37 = vpop.f32.mrb[22].mxu1 }
 0x2dc   : > { %v917_v38 = vadd.f32 %v1278_v37, %v1076_v24  ;;  %v911_v39 = vpop.f32.mrb[23].mxu1 }
 0x2dd   : > { %v912_v40 = vadd.f32 %v1076_v24, %v911_v39 }
 0x2de   : > { %968 = vst.msk [vmem:[%s1606_s28 + $0x38] sm:$0xff] %vm960_vm3, %v917_v38 }
 0x2df   : > { %967 = vst.msk [vmem:[%s1606_s28 + $0x30] sm:$0xff] %vm960_vm3, %v912_v40  ;;  %v1281_v41 = vpop.f32.mrb[24].mxu1 }
 0x2e0   : > { %v927_v42 = vadd.f32 %v1281_v41, %v1076_v24  ;;  %v921_v43 = vpop.f32.mrb[25].mxu1 }
 0x2e1   : > { %v922_v44 = vadd.f32 %v1076_v24, %v921_v43 }
 0x2e2   : > { %970 = vst.msk [vmem:[%s1606_s28 + $0x48] sm:$0xff] %vm960_vm3, %v927_v42 }
 0x2e3   : > { %969 = vst.msk [vmem:[%s1606_s28 + $0x40] sm:$0xff] %vm960_vm3, %v922_v44  ;;  %v1284_v45 = vpop.f32.mrb[26].mxu1 }
 0x2e4   : > { %v937_v46 = vadd.f32 %v1284_v45, %v1076_v24  ;;  %v931_v47 = vpop.f32.mrb[27].mxu1 }
 0x2e5   : > { %v932_v48 = vadd.f32 %v1076_v24, %v931_v47 }
 0x2e6   : > { %972 = vst.msk [vmem:[%s1606_s28 + $0x58] sm:$0xff] %vm960_vm3, %v937_v46 }
 0x2e7   : > { %971 = vst.msk [vmem:[%s1606_s28 + $0x50] sm:$0xff] %vm960_vm3, %v932_v48  ;;  %v1287_v49 = vpop.f32.mrb[28].mxu1 }
 0x2e8   : > { %v947_v50 = vadd.f32 %v1287_v49, %v1076_v24  ;;  %v941_v51 = vpop.f32.mrb[29].mxu1 }
 0x2e9   : > { %v942_v52 = vadd.f32 %v1076_v24, %v941_v51 }
 0x2ea   : > { %974 = vst.msk [vmem:[%s1606_s28 + $0x68] sm:$0xff] %vm960_vm3, %v947_v50 }
 0x2eb   : > { %973 = vst.msk [vmem:[%s1606_s28 + $0x60] sm:$0xff] %vm960_vm3, %v942_v52  ;;  %v1290_v53 = vpop.f32.mrb[30].mxu1 }
 0x2ec   : > { %v957_v54 = vadd.f32 %v1290_v53, %v1076_v24  ;;  %v951_v55 = vpop.f32.mrb[31].mxu1 }
 0x2ed   : > { %v952_v56 = vadd.f32 %v1076_v24, %v951_v55 }
 0x2ee   : > { %976 = vst.msk [vmem:[%s1606_s28 + $0x78] sm:$0xff] %vm960_vm3, %v957_v54 }
 0x2ef   : > { %975 = vst.msk [vmem:[%s1606_s28 + $0x70] sm:$0xff] %vm960_vm3, %v952_v56 }
 0x2f0 PF: > { %s17_s24 = sadd.s32 1, %s1369_s24  }
 0x2f1   : > { %p14_p4 = scmp.ge.s32.totalorder %s17_s24, 4  }
 0x2f3   :  { %16 = sbr.rel (!%p14_p4) target bundleno = 1 (0x1), region = 78 }

</bundles_post_ra>
